<compile_context>
chip_gen: v6e
topology: v6e:2x2x1
jax: 0.10.0
libtpu: 0.0.40
codegen_flags: <defaults>
</compile_context>

<pallas_src>
import functools

import numpy as np
import jax
import jax.numpy as jnp
from jax import lax
from jax.experimental import pallas as pl
from jax.experimental.pallas import tpu as pltpu

EPS = 1e-3  # BatchNorm eps used by torchvision BasicConv2d


def _round_up(x, m):
    return ((x + m - 1) // m) * m


def _cdiv(a, b):
    return -(-a // b)


def _vmem_capacity_bytes():
    try:
        return int(pltpu.get_tpu_info().vmem_capacity_bytes)
    except Exception:
        return 64 * 1024 * 1024   # conservative default (v7x per-TC)


_VMEM_CAP = _vmem_capacity_bytes()
MM_VMEM = min(int(_VMEM_CAP * 0.70), 96 * 1024 * 1024)     # matmul kernels
MM_BUDGET = int(MM_VMEM * 0.45)                            # tile-picking budget
CONV_VMEM = min(int(_VMEM_CAP * 0.75), 64 * 1024 * 1024)   # stride-1 slab convs
POOL_VMEM = min(int(_VMEM_CAP * 0.50), 48 * 1024 * 1024)   # pooling kernels


# --------------------------------------------------------------------------
# Fused matmul + bias + ReLU kernel (bf16 MXU, f32 accumulate, bf16 out)
# --------------------------------------------------------------------------
def _mm_kernel(a_ref, b_ref, bias_ref, o_ref, *, relu):
    a = a_ref[...].astype(jnp.bfloat16)               # no-op when already bf16
    acc = jnp.dot(a, b_ref[...], preferred_element_type=jnp.float32)
    acc = acc + bias_ref[...]
    if relu:
        acc = jnp.maximum(acc, 0.0)
    o_ref[...] = acc.astype(o_ref.dtype)


def _pick_tn(npad):
    """Largest lane-dense N tile (<=512) that divides npad."""
    if npad % 128 != 0:
        return npad
    q = npad // 128
    best = 1
    for d in range(1, q + 1):
        if q % d == 0 and d * 128 <= 512:
            best = d
    return best * 128


_TM_CANDIDATES = (16, 32, 64, 128, 256, 384, 512, 768, 1024, 1536, 2048, 3072, 4096)


def _pick_tm(m, k, tn, a_bytes, o_bytes, budget=None):
    """Largest row tile keeping double-buffered A/B/out under budget, then
    rebalanced so the last tile is not mostly padding (multiple of 16)."""
    budget = MM_BUDGET if budget is None else budget
    m16 = _round_up(m, 16)
    best = 16
    for cand in _TM_CANDIDATES:
        c = min(cand, m16)
        cost = 2 * c * k * a_bytes + 2 * k * tn * 2 + 2 * c * tn * o_bytes
        if cost <= budget:
            best = max(best, c)
        if cand >= m16:
            break
    ntiles = _cdiv(m16, best)
    return _round_up(_cdiv(m16, ntiles), 16)


def matmul_bias(a, b, bias, relu, out_dtype=jnp.bfloat16, strip=True):
    """out = maybe_relu(a @ b + bias); a:(M,K), b:(K,N) f32 (BN scale already
    folded in), bias:(N,).  Returns (M,N) (or padded (Mp,Np) if strip=False)."""
    m, k = a.shape
    k2, n = b.shape
    assert k == k2
    npad = _round_up(n, 128) if n >= 96 else n
    if npad != n:
        b = jnp.pad(b, ((0, 0), (0, npad - n)))
        bias = jnp.pad(bias, (0, npad - n))
    b = b.astype(jnp.bfloat16)
    bias2 = bias.reshape(1, npad).astype(jnp.float32)

    tn = _pick_tn(npad)
    a_bytes = 2 if a.dtype == jnp.bfloat16 else 4
    o_bytes = jnp.dtype(out_dtype).itemsize
    tm = _pick_tm(m, k, tn, a_bytes, o_bytes)
    mpad = _cdiv(m, tm) * tm
    if mpad != m:
        a = jnp.pad(a, ((0, mpad - m), (0, 0)))

    out = pl.pallas_call(
        functools.partial(_mm_kernel, relu=relu),
        out_shape=jax.ShapeDtypeStruct((mpad, npad), out_dtype),
        grid=(mpad // tm, npad // tn),
        in_specs=[
            pl.BlockSpec((tm, k), lambda i, j: (i, 0)),
            pl.BlockSpec((k, tn), lambda i, j: (0, j)),
            pl.BlockSpec((1, tn), lambda i, j: (0, j)),
        ],
        out_specs=pl.BlockSpec((tm, tn), lambda i, j: (i, j)),
        compiler_params=pltpu.CompilerParams(
            dimension_semantics=("parallel", "parallel"),
            vmem_limit_bytes=MM_VMEM),
    )(a, b, bias2)
    if strip and (mpad != m or npad != n):
        out = out[:m, :n]
    return out


# --------------------------------------------------------------------------
# Stride-1 conv as an implicit-im2col "slab" kernel (in-kernel zero padding,
# f32 scratch accumulation, single unpadded bf16 store)
# --------------------------------------------------------------------------
def _conv_s1_kernel(x_ref, w_ref, b_ref, o_ref, pad_ref, acc_ref,
                    *, kh, kw, ph, pw, relu):
    H, W, cin = x_ref.shape[1], x_ref.shape[2], x_ref.shape[3]
    Ho, Wo, cout = o_ref.shape[1], o_ref.shape[2], o_ref.shape[3]
    npad = acc_ref.shape[1]
    Wo_p = acc_ref.shape[0] // Ho
    # Build the zero-padded, width-aligned slab in VMEM (no HBM pad pass).
    pad_ref[...] = jnp.zeros_like(pad_ref)
    pad_ref[ph:ph + H, pw:pw + W, :] = x_ref[0]
    # One MXU dot per tap, accumulated in an f32 scratch (no o_ref RMW).
    for idx in range(kh * kw):
        i, j = idx // kw, idx % kw
        a = pad_ref[i:i + Ho, j:j + Wo_p, :].reshape(Ho * Wo_p, cin)
        part = jnp.dot(a, w_ref[idx], preferred_element_type=jnp.float32)
        if idx == 0:
            acc_ref[...] = part
        else:
            acc_ref[...] += part
    v = acc_ref[...] + b_ref[...]
    if relu:
        v = jnp.maximum(v, 0.0)
    v = v.reshape(Ho, Wo_p, npad)[:, :Wo, :cout]
    o_ref[0] = v.astype(o_ref.dtype)


def conv_s1_slab(x, p):
    """conv(stride=1) -> BN(eval, folded) -> ReLU, reading each activation once."""
    w = p["w"]
    cout, cin, kh, kw = w.shape
    ph, pw = p["pad"]
    B, H, W, C = x.shape
    assert C == cin
    Ho = H + 2 * ph - kh + 1
    Wo = W + 2 * pw - kw + 1
    Wo_p = _round_up(Wo, 8)            # sublane-aligned so in-kernel reshapes are free
    Wp_p = Wo_p + kw - 1
    Hp = H + 2 * ph

    scale = p["gamma"] / jnp.sqrt(p["var"] + EPS)
    bias = p["beta"] - p["mean"] * scale
    npad = _round_up(cout, 128) if cout >= 96 else cout
    wt = jnp.transpose(w, (2, 3, 1, 0)).reshape(kh * kw, cin, cout)
    wt = wt * scale[None, None, :]     # fold BN scale into the weights
    if npad != cout:
        wt = jnp.pad(wt, ((0, 0), (0, 0), (0, npad - cout)))
        bias = jnp.pad(bias, (0, npad - cout))
    wt = wt.astype(jnp.bfloat16)

    return pl.pallas_call(
        functools.partial(_conv_s1_kernel, kh=kh, kw=kw, ph=ph, pw=pw, relu=True),
        out_shape=jax.ShapeDtypeStruct((B, Ho, Wo, cout), jnp.bfloat16),
        grid=(B,),
        in_specs=[
            pl.BlockSpec((1, H, W, cin), lambda b: (b, 0, 0, 0)),
            pl.BlockSpec((kh * kw, cin, npad), lambda b: (0, 0, 0)),
            pl.BlockSpec((1, npad), lambda b: (0, 0)),
        ],
        out_specs=pl.BlockSpec((1, Ho, Wo, cout), lambda b: (b, 0, 0, 0)),
        scratch_shapes=[
            pltpu.VMEM((Hp, Wp_p, cin), jnp.bfloat16),
            pltpu.VMEM((Ho * Wo_p, npad), jnp.float32),
        ],
        compiler_params=pltpu.CompilerParams(
            dimension_semantics=("parallel",),
            vmem_limit_bytes=CONV_VMEM),
    )(x.astype(jnp.bfloat16), wt, bias.reshape(1, npad).astype(jnp.float32))


# --------------------------------------------------------------------------
# Explicit im2col path (only for the 5 stride-2 convs), bf16 patches
# --------------------------------------------------------------------------
def extract_patches(x, kh, kw, sh, sw, ph, pw):
    B, H, W, C = x.shape
    if ph or pw:
        x = jnp.pad(x, ((0, 0), (ph, ph), (pw, pw), (0, 0)))
    Ho = (H + 2 * ph - kh) // sh + 1
    Wo = (W + 2 * pw - kw) // sw + 1
    cols = []
    for i in range(kh):
        for j in range(kw):
            sl = lax.slice(x, (0, i, j, 0),
                           (B, i + sh * (Ho - 1) + 1, j + sw * (Wo - 1) + 1, C),
                           (1, sh, sw, 1))
            cols.append(sl)
    patches = jnp.stack(cols, axis=3)  # (B, Ho, Wo, kh*kw, C)
    return patches, Ho, Wo


def conv_im2col(x, p):
    w = p["w"]
    cout, cin, kh, kw = w.shape
    sh, sw = p["stride"]
    ph, pw = p["pad"]
    B = x.shape[0]
    patches, Ho, Wo = extract_patches(x.astype(jnp.bfloat16),
                                      kh, kw, sh, sw, ph, pw)
    a = patches.reshape(B * Ho * Wo, kh * kw * cin)
    scale = p["gamma"] / jnp.sqrt(p["var"] + EPS)
    bias = p["beta"] - p["mean"] * scale
    wmat = jnp.transpose(w, (2, 3, 1, 0)).reshape(kh * kw * cin, cout) * scale[None, :]
    y = matmul_bias(a, wmat, bias, relu=True)
    return y.reshape(B, Ho, Wo, cout)


# --------------------------------------------------------------------------
# 1x1 convs (several branches fused into one lane-dense matmul)
# --------------------------------------------------------------------------
def fused_conv1x1(x, plist, relu=True):
    B, H, W, C = x.shape
    m = B * H * W
    a = x.reshape(m, C)
    wmats, biases, couts = [], [], []
    for p in plist:
        w = p["w"]
        couts.append(w.shape[0])
        s = p["gamma"] / jnp.sqrt(p["var"] + EPS)
        wmats.append(jnp.transpose(w[:, :, 0, 0], (1, 0)) * s[None, :])
        biases.append(p["beta"] - p["mean"] * s)
    wm = jnp.concatenate(wmats, axis=1) if len(wmats) > 1 else wmats[0]
    bi = jnp.concatenate(biases) if len(biases) > 1 else biases[0]
    y = matmul_bias(a, wm, bi, relu=relu, strip=False)
    outs, off = [], 0
    for c in couts:
        outs.append(y[:m, off:off + c].reshape(B, H, W, c))
        off += c
    return outs


def conv_bn_relu(x, p):
    cout, cin, kh, kw = p["w"].shape
    sh, sw = p["stride"]
    if kh == 1 and kw == 1 and sh == 1 and sw == 1:
        return fused_conv1x1(x, [p])[0]
    if sh == 1 and sw == 1:
        return conv_s1_slab(x, p)
    return conv_im2col(x, p)


# --------------------------------------------------------------------------
# Pooling
# --------------------------------------------------------------------------
def _maxpool3_s2_kernel(x_ref, o_ref, xs_ref):
    # Fused 3x3/stride-2 max-pool: strided window reads from an f32 VMEM copy.
    Ho, Wo = o_ref.shape[1], o_ref.shape[2]
    xs_ref[...] = x_ref[0].astype(jnp.float32)
    r = None
    for i in range(3):
        for j in range(3):
            s = xs_ref[pl.ds(i, Ho, 2), pl.ds(j, Wo, 2), :]
            r = s if r is None else jnp.maximum(r, s)
    o_ref[0] = r.astype(o_ref.dtype)


def _maxpool3_s1_kernel(x_ref, o_ref):
    Ho, Wo = o_ref.shape[1], o_ref.shape[2]
    r = None
    for i in range(3):
        for j in range(3):
            s = x_ref[0, i:i + Ho, j:j + Wo, :]
            r = s if r is None else jnp.maximum(r, s)
    o_ref[0] = r


def max_pool_3x3_s2(x):
    B, H, W, C = x.shape
    Ho, Wo = (H - 3) // 2 + 1, (W - 3) // 2 + 1
    params = pltpu.CompilerParams(dimension_semantics=("parallel",),
                                  vmem_limit_bytes=POOL_VMEM)
    try:
        return pl.pallas_call(
            _maxpool3_s2_kernel,
            out_shape=jax.ShapeDtypeStruct((B, Ho, Wo, C), x.dtype),
            grid=(B,),
            in_specs=[pl.BlockSpec((1, H, W, C), lambda b: (b, 0, 0, 0))],
            out_specs=pl.BlockSpec((1, Ho, Wo, C), lambda b: (b, 0, 0, 0)),
            scratch_shapes=[pltpu.VMEM((H, W, C), jnp.float32)],
            compiler_params=params,
        )(x)
    except Exception:
        # Eager-mode fallback if strided ref reads fail to lower on this jaxlib:
        # exact stride-1 max pool, then subsample by 2 (the old, slower path).
        full = pl.pallas_call(
            _maxpool3_s1_kernel,
            out_shape=jax.ShapeDtypeStruct((B, H - 2, W - 2, C), x.dtype),
            grid=(B,),
            in_specs=[pl.BlockSpec((1, H, W, C), lambda b: (b, 0, 0, 0))],
            out_specs=pl.BlockSpec((1, H - 2, W - 2, C), lambda b: (b, 0, 0, 0)),
            compiler_params=params,
        )(x)
        return full[:, ::2, ::2, :]


def _avgpool3_s1p1_kernel(x_ref, o_ref, pad_ref):
    # F.avg_pool2d(x, 3, stride=1, padding=1), count_include_pad=True.
    H, W = x_ref.shape[1], x_ref.shape[2]
    pad_ref[...] = jnp.zeros_like(pad_ref)
    pad_ref[1:1 + H, 1:1 + W, :] = x_ref[0].astype(jnp.float32)
    r = None
    for i in range(3):
        for j in range(3):
            s = pad_ref[i:i + H, j:j + W, :]
            r = s if r is None else r + s
    o_ref[0] = (r * (1.0 / 9.0)).astype(o_ref.dtype)


def avg_pool_3x3_s1_p1(x):
    B, H, W, C = x.shape
    return pl.pallas_call(
        _avgpool3_s1p1_kernel,
        out_shape=jax.ShapeDtypeStruct((B, H, W, C), x.dtype),
        grid=(B,),
        in_specs=[pl.BlockSpec((1, H, W, C), lambda b: (b, 0, 0, 0))],
        out_specs=pl.BlockSpec((1, H, W, C), lambda b: (b, 0, 0, 0)),
        scratch_shapes=[pltpu.VMEM((H + 2, W + 2, C), jnp.float32)],
        compiler_params=pltpu.CompilerParams(
            dimension_semantics=("parallel",),
            vmem_limit_bytes=POOL_VMEM),
    )(x)


def _gap_kernel(x_ref, o_ref, *, divisor):
    o_ref[...] = jnp.sum(x_ref[...].astype(jnp.float32), axis=1) * (1.0 / divisor)


def global_avg_pool(x):
    # AdaptiveAvgPool2d((1,1)) + flatten
    B, H, W, C = x.shape
    xr = x.reshape(B, H * W, C)
    return pl.pallas_call(
        functools.partial(_gap_kernel, divisor=float(H * W)),
        out_shape=jax.ShapeDtypeStruct((B, C), jnp.float32),
        grid=(1,),
        in_specs=[pl.BlockSpec((B, H * W, C), lambda i: (0, 0, 0))],
        out_specs=pl.BlockSpec((B, C), lambda i: (0, 0)),
        compiler_params=pltpu.CompilerParams(
            dimension_semantics=("arbitrary",),
            vmem_limit_bytes=POOL_VMEM),
    )(xr)


# --------------------------------------------------------------------------
# Bilinear resize to 299x299 (align_corners=False) as two Pallas matmuls
# --------------------------------------------------------------------------
def _interp_matrix(out_size, in_size):
    i = np.arange(out_size, dtype=np.float64)
    src = (i + 0.5) * (in_size / out_size) - 0.5
    src = np.maximum(src, 0.0)
    i0 = np.minimum(np.floor(src).astype(np.int64), in_size - 1)
    i1 = np.minimum(i0 + 1, in_size - 1)
    lam = src - i0
    R = np.zeros((out_size, in_size), dtype=np.float32)
    R[np.arange(out_size), i0] += (1.0 - lam).astype(np.float32)
    R[np.arange(out_size), i1] += lam.astype(np.float32)
    return jnp.asarray(R)


def bilinear_resize_299(x):
    """x: (B,H,W,C) f32 -> (B,299,299,C) f32, PyTorch bilinear align_corners=False."""
    B, H, W, C = x.shape
    O = 299
    Rh = _interp_matrix(O, H)
    Rw = _interp_matrix(O, W)
    zero = jnp.zeros((O,), jnp.float32)
    xt = jnp.transpose(x, (0, 3, 1, 2)).reshape(B * C * H, W)
    t = matmul_bias(xt, Rw.T, zero, relu=False, out_dtype=jnp.float32)
    t = jnp.transpose(t.reshape(B * C, H, O), (0, 2, 1)).reshape(B * C * O, H)
    o = matmul_bias(t, Rh.T, zero, relu=False, out_dtype=jnp.float32)
    o = o.reshape(B, C, O, O)                 # (B, C, wo, ho)
    return jnp.transpose(o, (0, 3, 2, 1))     # (B, ho, wo, C)


# --------------------------------------------------------------------------
# Parameter construction (deterministic synthetic init)
# --------------------------------------------------------------------------
class KeyGen:
    def __init__(self, key):
        self.key = key

    def __call__(self):
        self.key, sub = jax.random.split(self.key)
        return sub


def init_conv(kg, cin, cout, kernel, stride=(1, 1), pad=(0, 0)):
    if isinstance(kernel, int):
        kh = kw = kernel
    else:
        kh, kw = kernel
    w = jax.random.normal(kg(), (cout, cin, kh, kw), jnp.float32)
    w = w * np.sqrt(2.0 / (cin * kh * kw))
    return dict(w=w,
                gamma=jnp.ones((cout,), jnp.float32),
                beta=jnp.zeros((cout,), jnp.float32),
                mean=jnp.zeros((cout,), jnp.float32),
                var=jnp.ones((cout,), jnp.float32),
                stride=tuple(stride), pad=tuple(pad))


def init_inception_a(kg, cin, pool_features):
    return dict(
        b1=init_conv(kg, cin, 64, 1),
        b5_1=init_conv(kg, cin, 48, 1),
        b5_2=init_conv(kg, 48, 64, 5, pad=(2, 2)),
        b3d_1=init_conv(kg, cin, 64, 1),
        b3d_2=init_conv(kg, 64, 96, 3, pad=(1, 1)),
        b3d_3=init_conv(kg, 96, 96, 3, pad=(1, 1)),
        bp=init_conv(kg, cin, pool_features, 1),
    )


def init_inception_b(kg, cin):
    return dict(
        b3=init_conv(kg, cin, 384, 3, stride=(2, 2)),
        b3d_1=init_conv(kg, cin, 64, 1),
        b3d_2=init_conv(kg, 64, 96, 3, pad=(1, 1)),
        b3d_3=init_conv(kg, 96, 96, 3, stride=(2, 2)),
    )


def init_inception_c(kg, cin, c7):
    return dict(
        b1=init_conv(kg, cin, 192, 1),
        b7_1=init_conv(kg, cin, c7, 1),
        b7_2=init_conv(kg, c7, c7, (1, 7), pad=(0, 3)),
        b7_3=init_conv(kg, c7, 192, (7, 1), pad=(3, 0)),
        b7d_1=init_conv(kg, cin, c7, 1),
        b7d_2=init_conv(kg, c7, c7, (7, 1), pad=(3, 0)),
        b7d_3=init_conv(kg, c7, c7, (1, 7), pad=(0, 3)),
        b7d_4=init_conv(kg, c7, c7, (7, 1), pad=(3, 0)),
        b7d_5=init_conv(kg, c7, 192, (1, 7), pad=(0, 3)),
        bp=init_conv(kg, cin, 192, 1),
    )


def init_inception_d(kg, cin):
    return dict(
        b3_1=init_conv(kg, cin, 192, 1),
        b3_2=init_conv(kg, 192, 320, 3, stride=(2, 2)),
        b7_1=init_conv(kg, cin, 192, 1),
        b7_2=init_conv(kg, 192, 192, (1, 7), pad=(0, 3)),
        b7_3=init_conv(kg, 192, 192, (7, 1), pad=(3, 0)),
        b7_4=init_conv(kg, 192, 192, 3, stride=(2, 2)),
    )


def init_inception_e(kg, cin):
    return dict(
        b1=init_conv(kg, cin, 320, 1),
        b3_1=init_conv(kg, cin, 384, 1),
        b3_2a=init_conv(kg, 384, 384, (1, 3), pad=(0, 1)),
        b3_2b=init_conv(kg, 384, 384, (3, 1), pad=(1, 0)),
        b3d_1=init_conv(kg, cin, 448, 1),
        b3d_2=init_conv(kg, 448, 384, 3, pad=(1, 1)),
        b3d_3a=init_conv(kg, 384, 384, (1, 3), pad=(0, 1)),
        b3d_3b=init_conv(kg, 384, 384, (3, 1), pad=(1, 0)),
        bp=init_conv(kg, cin, 192, 1),
    )


def init_params(seed=0, num_classes=2):
    kg = KeyGen(jax.random.PRNGKey(seed))
    p = {}
    p["Conv2d_1a_3x3"] = init_conv(kg, 1, 32, 3, stride=(2, 2))   # replaced stem (1-channel)
    p["Conv2d_2a_3x3"] = init_conv(kg, 32, 32, 3)
    p["Conv2d_2b_3x3"] = init_conv(kg, 32, 64, 3, pad=(1, 1))
    p["Conv2d_3b_1x1"] = init_conv(kg, 64, 80, 1)
    p["Conv2d_4a_3x3"] = init_conv(kg, 80, 192, 3)
    p["Mixed_5b"] = init_inception_a(kg, 192, 32)
    p["Mixed_5c"] = init_inception_a(kg, 256, 64)
    p["Mixed_5d"] = init_inception_a(kg, 288, 64)
    p["Mixed_6a"] = init_inception_b(kg, 288)
    p["Mixed_6b"] = init_inception_c(kg, 768, 128)
    p["Mixed_6c"] = init_inception_c(kg, 768, 160)
    p["Mixed_6d"] = init_inception_c(kg, 768, 160)
    p["Mixed_6e"] = init_inception_c(kg, 768, 192)
    p["Mixed_7a"] = init_inception_d(kg, 768)
    p["Mixed_7b"] = init_inception_e(kg, 1280)
    p["Mixed_7c"] = init_inception_e(kg, 2048)
    p["fc_w"] = jax.random.normal(kg(), (num_classes, 2048), jnp.float32) / np.sqrt(2048.0)
    p["fc_b"] = jax.random.normal(kg(), (num_classes,), jnp.float32) * 0.01
    return p


# --------------------------------------------------------------------------
# Inception block forwards (1x1 branches sharing an input are fused)
# --------------------------------------------------------------------------
def inception_a(x, p):
    b1, b5, b3 = fused_conv1x1(x, [p["b1"], p["b5_1"], p["b3d_1"]])
    b5 = conv_bn_relu(b5, p["b5_2"])
    b3 = conv_bn_relu(conv_bn_relu(b3, p["b3d_2"]), p["b3d_3"])
    bp = conv_bn_relu(avg_pool_3x3_s1_p1(x), p["bp"])
    return jnp.concatenate([b1, b5, b3, bp], axis=-1)


def inception_b(x, p):
    b3 = conv_bn_relu(x, p["b3"])
    b3d = conv_bn_relu(conv_bn_relu(conv_bn_relu(x, p["b3d_1"]), p["b3d_2"]), p["b3d_3"])
    bp = max_pool_3x3_s2(x)
    return jnp.concatenate([b3, b3d, bp], axis=-1)


def inception_c(x, p):
    b1, b7, b7d = fused_conv1x1(x, [p["b1"], p["b7_1"], p["b7d_1"]])
    b7 = conv_bn_relu(conv_bn_relu(b7, p["b7_2"]), p["b7_3"])
    for k in ("b7d_2", "b7d_3", "b7d_4", "b7d_5"):
        b7d = conv_bn_relu(b7d, p[k])
    bp = conv_bn_relu(avg_pool_3x3_s1_p1(x), p["bp"])
    return jnp.concatenate([b1, b7, b7d, bp], axis=-1)


def inception_d(x, p):
    b3, b7 = fused_conv1x1(x, [p["b3_1"], p["b7_1"]])
    b3 = conv_bn_relu(b3, p["b3_2"])
    for k in ("b7_2", "b7_3", "b7_4"):
        b7 = conv_bn_relu(b7, p[k])
    bp = max_pool_3x3_s2(x)
    return jnp.concatenate([b3, b7, bp], axis=-1)


def inception_e(x, p):
    b1, b3, b3d = fused_conv1x1(x, [p["b1"], p["b3_1"], p["b3d_1"]])
    b3 = jnp.concatenate([conv_bn_relu(b3, p["b3_2a"]),
                          conv_bn_relu(b3, p["b3_2b"])], axis=-1)
    b3d = conv_bn_relu(b3d, p["b3d_2"])
    b3d = jnp.concatenate([conv_bn_relu(b3d, p["b3d_3a"]),
                           conv_bn_relu(b3d, p["b3d_3b"])], axis=-1)
    bp = conv_bn_relu(avg_pool_3x3_s1_p1(x), p["bp"])
    return jnp.concatenate([b1, b3, b3d, bp], axis=-1)


# --------------------------------------------------------------------------
# Full forward (matches InceptionNet.forward semantics, inference mode)
# --------------------------------------------------------------------------
def inception_net_forward(x_nchw, params):
    # x_nchw: (B, 1, H, W) — PyTorch NCHW; internally NHWC bf16.
    x = jnp.transpose(x_nchw, (0, 2, 3, 1)).astype(jnp.float32)
    x = bilinear_resize_299(x)                       # (B, 299, 299, 1) f32
    x = conv_bn_relu(x, params["Conv2d_1a_3x3"])     # 149x149x32
    x = conv_bn_relu(x, params["Conv2d_2a_3x3"])     # 147x147x32
    x = conv_bn_relu(x, params["Conv2d_2b_3x3"])     # 147x147x64
    x = max_pool_3x3_s2(x)                           # 73x73x64
    x = conv_bn_relu(x, params["Conv2d_3b_1x1"])     # 73x73x80
    x = conv_bn_relu(x, params["Conv2d_4a_3x3"])     # 71x71x192
    x = max_pool_3x3_s2(x)                           # 35x35x192
    x = inception_a(x, params["Mixed_5b"])           # 35x35x256
    x = inception_a(x, params["Mixed_5c"])           # 35x35x288
    x = inception_a(x, params["Mixed_5d"])           # 35x35x288
    x = inception_b(x, params["Mixed_6a"])           # 17x17x768
    x = inception_c(x, params["Mixed_6b"])           # 17x17x768
    x = inception_c(x, params["Mixed_6c"])           # 17x17x768
    x = inception_c(x, params["Mixed_6d"])           # 17x17x768
    x = inception_c(x, params["Mixed_6e"])           # 17x17x768
    x = inception_d(x, params["Mixed_7a"])           # 8x8x1280
    x = inception_e(x, params["Mixed_7b"])           # 8x8x2048
    x = inception_e(x, params["Mixed_7c"])           # 8x8x2048
    feat = global_avg_pool(x)                        # (B, 2048); dropout=identity (eval)
    # encoder.fc = Identity; classifier head: Linear(2048, num_classes)
    logits = matmul_bias(feat, params["fc_w"].T, params["fc_b"],
                         relu=False, out_dtype=jnp.float32)
    return logits


if __name__ == "__main__":
    key = jax.random.PRNGKey(0)
    x = jax.random.normal(key, (2, 1, 16, 16), jnp.float32)  # (B, C=1, H, W)
    params = init_params(seed=0, num_classes=2)
    logits = inception_net_forward(x, params)
    logits = jax.block_until_ready(logits)
    assert logits.shape == (2, 2)
    assert bool(jnp.all(jnp.isfinite(logits)))
    print("KERNEL_OK")
</pallas_src>

<mosaic_0001>
module attributes {stable_mosaic.version = 11 : i64} {
  func.func @_mm_kernel(%arg0: i32, %arg1: i32, %arg2: memref<32x16xf32, #tpu.memory_space<vmem>>, %arg3: memref<16x384xbf16, #tpu.memory_space<vmem>>, %arg4: memref<1x384xf32, #tpu.memory_space<vmem>>, %arg5: memref<32x384xf32, #tpu.memory_space<vmem>>) attributes {dimension_semantics = [#tpu.dimension_semantics<parallel>, #tpu.dimension_semantics<parallel>], iteration_bounds = array<i64: 1, 1>, scalar_prefetch = 0 : i64, scratch_operands = 0 : i64, tpu.core_type = #tpu.core_type<tc>, window_params = [{transform_indices = @transform_0, window_bounds = array<i64: 32, 16>}, {transform_indices = @transform_1, window_bounds = array<i64: 16, 384>}, {transform_indices = @transform_2, window_bounds = array<i64: 1, 384>}, {transform_indices = @transform_3, window_bounds = array<i64: 32, 384>}]} {
    %c0 = arith.constant 0 : index
    %c0_0 = arith.constant 0 : index
    %0 = vector.load %arg2[%c0, %c0_0] : memref<32x16xf32, #tpu.memory_space<vmem>>, vector<32x16xf32>
    %1 = arith.truncf %0 : vector<32x16xf32> to vector<32x16xbf16>
    %c0_1 = arith.constant 0 : index
    %c0_2 = arith.constant 0 : index
    %2 = vector.load %arg3[%c0_1, %c0_2] : memref<16x384xbf16, #tpu.memory_space<vmem>>, vector<16x384xbf16>
    %cst = arith.constant dense<0.000000e+00> : vector<32x384xf32>
    %3 = tpu.matmul %1, %2, %cst {dimension_numbers = #tpu.dot_dimension_numbers<[1], [0], [0], [1], [0, 0, 1, 1], [], []>} : vector<32x16xbf16>, vector<16x384xbf16>, vector<32x384xf32> -> vector<32x384xf32>
    %c0_3 = arith.constant 0 : index
    %c0_4 = arith.constant 0 : index
    %4 = vector.load %arg4[%c0_3, %c0_4] : memref<1x384xf32, #tpu.memory_space<vmem>>, vector<1x384xf32>
    %5 = vector.broadcast %4 : vector<1x384xf32> to vector<32x384xf32>
    %6 = arith.addf %3, %5 : vector<32x384xf32>
    %c0_5 = arith.constant 0 : index
    %c0_6 = arith.constant 0 : index
    %7 = vector.load %arg5[%c0_5, %c0_6] : memref<32x384xf32, #tpu.memory_space<vmem>>, vector<32x384xf32>
    tpu.vector_store %arg5[%c0_5, %c0_6], %6 {strides = array<i32>} : memref<32x384xf32, #tpu.memory_space<vmem>>, vector<32x384xf32>,
    return
  }
  func.func @transform_0(%arg0: i32, %arg1: i32) -> (i32, i32) {
    %c0_i32 = arith.constant 0 : i32
    %c0_i32_0 = arith.constant 0 : i32
    return %arg0, %c0_i32 : i32, i32
  }
  func.func @transform_1(%arg0: i32, %arg1: i32) -> (i32, i32) {
    %c0_i32 = arith.constant 0 : i32
    %c0_i32_0 = arith.constant 0 : i32
    return %c0_i32, %arg1 : i32, i32
  }
  func.func @transform_2(%arg0: i32, %arg1: i32) -> (i32, i32) {
    %c0_i32 = arith.constant 0 : i32
    %c0_i32_0 = arith.constant 0 : i32
    return %c0_i32, %arg1 : i32, i32
  }
  func.func @transform_3(%arg0: i32, %arg1: i32) -> (i32, i32) {
    %c0_i32 = arith.constant 0 : i32
    return %arg0, %arg1 : i32, i32
  }
}

</mosaic_0001>

<bundles_post_ra>
// kernel: tpu_custom_call.1
= control target key start
LH: loop header
LB: loop body
LE: loop exit
PB: predicated region body
PF: predicated region fallthrough
CT: control target
= control target key end

     0   :  { %v242_v2 = vmov 0   ;;  %vm59_vm0 = vcmask 130048   ;;  %s293_s0 = inlined_call_operand.vmem [shape: f32[32,16], index: 0, kind: input, shape index: {}]   ;;  %s294_s1 = inlined_call_operand.vmem [shape: bf16[16,384], index: 1, kind: input, shape index: {}]   ;;  %s295_s2 = inlined_call_operand.vmem [shape: f32[1,384], index: 2, kind: input, shape index: {}]   ;;  %s296_s3 = inlined_call_operand.hbm [shape: f32[32,384], index: 3, kind: output, shape index: {}]  }
   0x1   :  { %v216_v0 = vld [vmem:[%s294_s1 + $0x4] ss:$12 sps:$4 sm:$0xff]   ;;  %v218_v1 = vld [vmem:[%s294_s1] ss:$12 sps:$4 sm:$0xff]   ;;  %98 = vmatprep.mubr.bf16.mxu0 %v242_v2  ;;  %v219_v3 = vld [vmem:[%s294_s1 + $0x8] ss:$12 sps:$4 sm:$0xff]  }
   0x2   :  { %80 = vmatprep.subr.bf16.mxu0 %v216_v0  ;;  %v16_v4 = vld [vmem:[%s293_s0] sm:$0xff]  ;;  %v17_v5 = vld [vmem:[%s293_s0 + $0x8] sm:$0xff]  ;;  %v18_v7 = vld [vmem:[%s293_s0 + $0x10] sm:$0xff]  ;;  %206 = vmatprep.subr.bf16.mxu1 %v219_v3 }
   0x3   :  { %81 = vmatpush1.bf16.msra.mxu0 %v218_v1  ;;  %v20_v6 = vpack.c.bf16 %v17_v5, %v16_v4  ;;  %v19_v8 = vld [vmem:[%s293_s0 + $0x18] sm:$0xff] }
   0x4   :  { %v21_v9 = vpack.c.bf16 %v19_v8, %v18_v7 }
   0x5   :  { %8 = vsyncpa [#allocation3], 0  ;;  %207 = vmatpush3.bf16.msra.mxu1 %v219_v3  ;;  %208 = vmatprep.mubr.msk.bf16.mxu1 %vm59_vm0, %v20_v6  ;;  %v28_v10 = vlaneseq  ;;  %v26_v13 = vld [vmem:[%s295_s2] sm:$0x7]  ;;  %s243_s0 = smov [#allocation2]  }
   0x6   :  { %199 = vmatmul.mubr.msk.bf16.vlgmr.msra.gmra.mxu0 %vm59_vm0, %v20_v6  ;;  %s185_s2 = sshll.u32 %s243_s0, 4  ;;  %s186_s2 = int_to_ptr.vmem [resolvable:$true] %s185_s2 }
   0x7   :  { %108 = vmatprep.mubr.bf16.mxu0 %v242_v2  ;;  %v29_v11 = vshrl.u32 %v28_v10, 7  ;;  %s220_s27 = scalar_lea.vmem %s186_s2, 1536  ;;  %p225_p1 = scmp.lt.s32.totalorder %s186_s2, %s186_s2 }
   0x8   :  { %209 = vmatmul.mubr.msk.bf16.vlgmr.msra.gmra.mxu1 %vm59_vm0, %v21_v9  ;;  %p221_p0 = scmp.ne.s32.totalorder %s186_s2, %s220_s27  ;;  %p226_p2 = scmp.lt.s32.totalorder %s220_s27, %s220_s27 }
   0x9   :  { %v30_v12 = vsub.s32 0, %v29_v11  ;;  %v34_v14 = vsub.s32 1, %v29_v11  ;;  %v38_v15 = vsub.s32 2, %v29_v11 }
   0xa   :  { %p227_p3 = por %p226_p2, %p225_p1 }
   0xb   :  { %v31_v16 = vrot.slane %v26_v13, %v30_v12  ;;  %v35_v17 = vrot.slane %v26_v13, %v34_v14  ;;  %v39_v18 = vrot.slane %v26_v13, %v38_v15 }
   0xc   :  { %p228_p4 = pnand %p227_p3, %p221_p0 }
   0xe   :  { %200 = vmatmul.mubr.msk.bf16.gmra.mxu0 %vm59_vm0, %v21_v9 }
  0xc6   :  { %v100_v19 = vpop.f32.mrf.mxu0 }
  0xc7   :  { %v101_v20 = vadd.f32 %v100_v19, %v31_v16 }
  0xc8   :  { %v102_v21 = vpop.f32.mrf.mxu0  ;;  %v210_v22 = vpop.f32.mrf.mxu1 }
  0xc9   :  { %168 = vst [vmem:[#allocation2] sm:$0xff] %v101_v20  ;;  %v103_v23 = vadd.f32 %v102_v21, %v35_v17  ;;  %v162_v24 = vadd.f32 %v210_v22, %v39_v18 }
  0xca   :  { %v104_v25 = vpop.f32.mrf.mxu0  ;;  %v153_v26 = vpop.f32.mrf.mxu1 }
  0xcb   :  { %169 = vst [vmem:[#allocation2 + $0x8] sm:$0xff] %v103_v23  ;;  %176 = vst [vmem:[#allocation2 + $0x40] sm:$0xff] %v162_v24  ;;  %v105_v27 = vadd.f32 %v104_v25, %v31_v16  ;;  %v154_v28 = vadd.f32 %v153_v26, %v39_v18 }
  0xcc   :  { %v106_v29 = vpop.f32.mrf.mxu0  ;;  %v211_v30 = vpop.f32.mrf.mxu1 }
  0xcd   :  { %171 = vst [vmem:[#allocation2 + $0x18] sm:$0xff] %v105_v27  ;;  %170 = vst [vmem:[#allocation2 + $0x10] sm:$0xff] %v154_v28  ;;  %v107_v31 = vadd.f32 %v106_v29, %v35_v17  ;;  %v165_v32 = vadd.f32 %v211_v30, %v39_v18 }
  0xce   :  { %v110_v33 = vpop.f32.mrf.mxu0  ;;  %v156_v34 = vpop.f32.mrf.mxu1 }
  0xcf   :  { %172 = vst [vmem:[#allocation2 + $0x20] sm:$0xff] %v107_v31  ;;  %179 = vst [vmem:[#allocation2 + $0x58] sm:$0xff] %v165_v32  ;;  %v111_v35 = vadd.f32 %v110_v33, %v31_v16  ;;  %v157_v36 = vadd.f32 %v156_v34, %v39_v18 }
  0xd0   :  { %v112_v37 = vpop.f32.mrf.mxu0 }
  0xd1   :  { %174 = vst [vmem:[#allocation2 + $0x30] sm:$0xff] %v111_v35  ;;  %173 = vst [vmem:[#allocation2 + $0x28] sm:$0xff] %v157_v36  ;;  %v113_v38 = vadd.f32 %v112_v37, %v35_v17 }
  0xd2   :  { %v114_v39 = vpop.f32.mrf.mxu0 }
  0xd3   :  { %175 = vst [vmem:[#allocation2 + $0x38] sm:$0xff] %v113_v38  ;;  %v115_v40 = vadd.f32 %v114_v39, %v31_v16 }
  0xd4   :  { %v116_v41 = vpop.f32.mrf.mxu0 }
  0xd5   :  { %177 = vst [vmem:[#allocation2 + $0x48] sm:$0xff] %v115_v40  ;;  %v117_v42 = vadd.f32 %v116_v41, %v35_v17 }
  0xd7   :  { %178 = vst [vmem:[#allocation2 + $0x50] sm:$0xff] %v117_v42 }
  0xd8   :  { %231 = shalt.err (!%p228_p4)
}
  0xd9   :  { %s244_s28 = smov 384   ;;  %s245_s29 = smov 24  }
  0xda   :  { %191 = dma.vmem_to_hbm [thread:$0]  %s186_s2, 1536, %s296_s3, [#allocation3], %s244_s28, %s244_s28, %s245_s29  }
  0xdb   :  { %240 = dma.done.wait [#allocation3], 1536  }
  0xdc   :  { %241 = vsyncadd [#allocation3], 4294965760 }
  0xdd   :  { %195 = vsyncpa [#allocation3], 1 }

</bundles_post_ra>
